<compile_context>
chip_gen: v7x
topology: tpu7x:2x2x1
jax: 0.10.0
libtpu: 0.0.40
codegen_flags: <defaults>
</compile_context>

<pallas_src>
import functools

import jax
import jax.numpy as jnp
from jax.experimental import pallas as pl
from jax.experimental.pallas import tpu as pltpu


# ------------------------------- Pallas kernel ------------------------------

def ms_cam_kernel(x_ref, w1_ref, b1_ref, w2_ref, xg_ref, o_ref, *, fuse_scale):
    x = x_ref[0]                                   # (C, TL) in caller dtype
    xc = x.astype(w1_ref.dtype)                    # bf16 cast in-kernel (no extra HBM pass)

    # local branch: 1x1 conv (+folded BN) -> ReLU -> 1x1 conv (BN folded, bias in xg)
    h = jnp.dot(w1_ref[...], xc, preferred_element_type=jnp.float32) + b1_ref[...]
    h = jnp.maximum(h, 0.0)                                           # ReLU (f32)
    xl = jnp.dot(w2_ref[...], h.astype(w2_ref.dtype),
                 preferred_element_type=jnp.float32)                  # (C, TL) f32

    # hoisted global-branch logits (+ folded b2), broadcast over L; sigmoid in f32
    mask = jax.nn.sigmoid(xl + xg_ref[0])
    if fuse_scale:
        o_ref[0] = (mask * x.astype(jnp.float32)).astype(o_ref.dtype)
    else:
        o_ref[0] = mask.astype(o_ref.dtype)


# --------------------------------- wrapper ----------------------------------

def _choose_l_tile(L, C, Ci, x_bytes, out_bytes, budget_bytes, batch):
    """Lane-dense L tile sized against a VMEM budget (double-buffered in/out)."""
    # bytes per L-column: 2x buffered input tile + 2x buffered output tile
    # + single-buffered f32 intermediates (h and xl)
    per_col = 2 * C * x_bytes + 2 * C * out_bytes + 4 * (C + Ci)
    tl_cap = max(128, (budget_bytes // per_col) // 128 * 128)
    tl_cap = min(tl_cap, 8192)

    if L <= tl_cap:
        tl = L                                   # full L, no partial tiles
    else:
        tl = 0
        for cand in range(tl_cap, 127, -128):    # largest 128-multiple divisor of L
            if L % cand == 0:
                tl = cand
                break
        if tl == 0:
            tl = tl_cap                          # partial last tile (columns independent,
                                                 # OOB columns discarded on store)
    # v7x has 2 TensorCores: keep >= 2 parallel grid steps when possible.
    if batch * pl.cdiv(L, tl) < 2 and L >= 256:
        tl = max(128, (((L + 1) // 2 + 127) // 128) * 128)
    return tl


def ms_cam(x, params, *, l_tile=None, compute_dtype=jnp.bfloat16, out_dtype=None,
           fuse_scale=False, vmem_budget_bytes=20 * 1024 * 1024):
    B, C, L = x.shape
    Ci = params["w1"].shape[0]
    if out_dtype is None:
        out_dtype = x.dtype if fuse_scale else jnp.bfloat16

    # ---- global attention branch, hoisted out of the kernel (tiny (C,1) work) ----
    g = jnp.mean(x, axis=-1, keepdims=True, dtype=jnp.float32)       # AdaptiveAvgPool1d(1)
    hg = jnp.maximum(
        jnp.einsum('oi,bil->bol', params["w1g"], g) + params["b1g"][None], 0.0)
    xg = jnp.einsum('oi,bil->bol', params["w2g"], hg) + params["b2g"][None]
    # fold the local-branch second bias into the hoisted logits (perf review)
    xg = (xg + params["b2"][None]).astype(jnp.float32)               # (B, C, 1)

    x_bytes = jnp.dtype(x.dtype).itemsize
    out_bytes = jnp.dtype(out_dtype).itemsize
    tl = l_tile if l_tile is not None else _choose_l_tile(
        L, C, Ci, x_bytes, out_bytes, vmem_budget_bytes, B)
    n_l = pl.cdiv(L, tl)

    # bf16 matmul operands (tiny), f32 bias
    w1 = params["w1"].astype(compute_dtype)      # (Ci, C)
    w2 = params["w2"].astype(compute_dtype)      # (C, Ci)
    b1 = params["b1"].astype(jnp.float32)        # (Ci, 1)

    cost = pl.CostEstimate(
        flops=4 * B * C * Ci * L,                                 # two C<->Ci matmuls / column
        transcendentals=2 * B * C * L,                            # sigmoid ~ exp + reciprocal
        bytes_accessed=B * C * L * (x_bytes + out_bytes)
        + 2 * C * Ci * jnp.dtype(compute_dtype).itemsize
        + (Ci + B * C) * 4,
    )

    kernel = functools.partial(ms_cam_kernel, fuse_scale=fuse_scale)

    return pl.pallas_call(
        kernel,
        out_shape=jax.ShapeDtypeStruct((B, C, L), out_dtype),
        grid=(B, n_l),
        in_specs=[
            pl.BlockSpec((1, C, tl), lambda b, l: (b, 0, l)),     # x tile (read once)
            pl.BlockSpec((Ci, C), lambda b, l: (0, 0)),           # local conv1 W (BN folded)
            pl.BlockSpec((Ci, 1), lambda b, l: (0, 0)),           # local conv1 bias
            pl.BlockSpec((C, Ci), lambda b, l: (0, 0)),           # local conv2 W (BN folded)
            pl.BlockSpec((1, C, 1), lambda b, l: (b, 0, 0)),      # hoisted global logits (+b2)
        ],
        out_specs=pl.BlockSpec((1, C, tl), lambda b, l: (b, 0, l)),
        compiler_params=pltpu.CompilerParams(
            dimension_semantics=("parallel", "parallel"),
            vmem_limit_bytes=48 * 1024 * 1024,
        ),
        cost_estimate=cost,
    )(x, w1, b1, w2, xg)


# ----------------------------- parameter setup ------------------------------

def _fold_conv_bn(w, b, gamma, beta, mean, var, eps=1e-5):
    """Fold inference-mode BatchNorm1d into a preceding 1x1 Conv1d."""
    scale = gamma / jnp.sqrt(var + eps)          # (O,)
    w_eff = w * scale[:, None]                   # (O, I)
    b_eff = scale * (b - mean) + beta            # (O,)
    return w_eff, b_eff[:, None]                 # bias kept 2D for broadcast


def init_params(key, channels, r=4):
    ci = channels // r
    ks = jax.random.split(key, 12)

    def conv(k, o, i):
        return 0.1 * jax.random.normal(k, (o, i), jnp.float32)

    def bias(k, o):
        return 0.1 * jax.random.normal(k, (o,), jnp.float32)

    def bn(k, o):
        kg, kb, km, kv = jax.random.split(k, 4)
        gamma = 1.0 + 0.1 * jax.random.normal(kg, (o,), jnp.float32)
        beta = 0.1 * jax.random.normal(kb, (o,), jnp.float32)
        mean = 0.1 * jax.random.normal(km, (o,), jnp.float32)
        var = jax.random.uniform(kv, (o,), jnp.float32, 0.5, 1.5)
        return gamma, beta, mean, var

    # local branch
    w1, b1 = _fold_conv_bn(conv(ks[0], ci, channels), bias(ks[1], ci), *bn(ks[2], ci))
    w2, b2 = _fold_conv_bn(conv(ks[3], channels, ci), bias(ks[4], channels), *bn(ks[5], channels))
    # global branch
    w1g, b1g = _fold_conv_bn(conv(ks[6], ci, channels), bias(ks[7], ci), *bn(ks[8], ci))
    w2g, b2g = _fold_conv_bn(conv(ks[9], channels, ci), bias(ks[10], channels), *bn(ks[11], channels))

    return dict(w1=w1, b1=b1, w2=w2, b2=b2, w1g=w1g, b1g=b1g, w2g=w2g, b2g=b2g)


# ------------------------------ pure-JAX ref ---------------------------------

def ms_cam_ref(x, p):
    xl = jnp.maximum(jnp.einsum('oi,bil->bol', p["w1"], x) + p["b1"][None], 0.0)
    xl = jnp.einsum('oi,bil->bol', p["w2"], xl) + p["b2"][None]
    g = jnp.mean(x, axis=-1, keepdims=True)                     # AdaptiveAvgPool1d(1)
    xg = jnp.maximum(jnp.einsum('oi,bil->bol', p["w1g"], g) + p["b1g"][None], 0.0)
    xg = jnp.einsum('oi,bil->bol', p["w2g"], xg) + p["b2g"][None]
    return jax.nn.sigmoid(xl + xg)


if __name__ == "__main__":
    key = jax.random.PRNGKey(0)
    k_x, k_p, k_x2, k_x3 = jax.random.split(key, 4)

    # 1) small toy case (L < 128 -> single full-L tile), bf16 mask output
    B, C, L, r = 2, 64, 16, 4
    x = jax.random.normal(k_x, (B, C, L), jnp.float32)
    params = init_params(k_p, C, r)
    out = jax.block_until_ready(ms_cam(x, params))
    ref = ms_cam_ref(x, params)
    assert out.shape == (B, C, L) and out.dtype == jnp.bfloat16
    assert jnp.allclose(out.astype(jnp.float32), ref, atol=2e-2, rtol=2e-2), \
        "toy-case mismatch vs reference"

    # 1b) fused epilogue (x * mask), f32 output
    out_f = jax.block_until_ready(ms_cam(x, params, fuse_scale=True))
    assert out_f.dtype == x.dtype
    assert jnp.allclose(out_f, x * ref, atol=1e-1, rtol=5e-2), \
        "fused-scale mismatch vs reference"

    # 2) tiled case: (batch, L-tile) grid with lane-dense 256-wide tiles
    B2, C2, L2 = 2, 128, 512
    x2 = jax.random.normal(k_x2, (B2, C2, L2), jnp.float32)
    params2 = init_params(k_p, C2, r)
    out2 = jax.block_until_ready(ms_cam(x2, params2, l_tile=256))
    ref2 = ms_cam_ref(x2, params2)
    assert jnp.allclose(out2.astype(jnp.float32), ref2, atol=2e-2, rtol=2e-2), \
        "tiled-case mismatch vs reference"

    # 3) partial last tile: L=600 with 256-wide tiles (OOB columns masked on store)
    B3, C3, L3 = 1, 64, 600
    x3 = jax.random.normal(k_x3, (B3, C3, L3), jnp.float32)
    out3 = jax.block_until_ready(ms_cam(x3, params, l_tile=256))
    ref3 = ms_cam_ref(x3, params)
    assert out3.shape == (B3, C3, L3)
    assert jnp.allclose(out3.astype(jnp.float32), ref3, atol=2e-2, rtol=2e-2), \
        "partial-tile mismatch vs reference"

    print("KERNEL_OK")
</pallas_src>

<mosaic_0001>
module attributes {stable_mosaic.version = 11 : i64} {
  func.func @ms_cam_kernel(%arg0: i32, %arg1: i32, %arg2: memref<1x64x16xf32, #tpu.memory_space<vmem>>, %arg3: memref<16x64xbf16, #tpu.memory_space<vmem>>, %arg4: memref<16x1xf32, #tpu.memory_space<vmem>>, %arg5: memref<64x16xbf16, #tpu.memory_space<vmem>>, %arg6: memref<1x64x1xf32, #tpu.memory_space<vmem>>, %arg7: memref<1x64x16xbf16, #tpu.memory_space<vmem>>) attributes {dimension_semantics = [#tpu.dimension_semantics<parallel>, #tpu.dimension_semantics<parallel>], iteration_bounds = array<i64: 2, 1>, scalar_prefetch = 0 : i64, scratch_operands = 0 : i64, tpu.core_type = #tpu.core_type<tc>, window_params = [{transform_indices = @transform_0, window_bounds = array<i64: 1, 64, 16>}, {pipeline_mode = #tpu.pipeline_mode<synchronous>, transform_indices = @transform_1, window_bounds = array<i64: 16, 64>}, {pipeline_mode = #tpu.pipeline_mode<synchronous>, transform_indices = @transform_2, window_bounds = array<i64: 16, 1>}, {pipeline_mode = #tpu.pipeline_mode<synchronous>, transform_indices = @transform_3, window_bounds = array<i64: 64, 16>}, {transform_indices = @transform_4, window_bounds = array<i64: 1, 64, 1>}, {transform_indices = @transform_5, window_bounds = array<i64: 1, 64, 16>}]} {
    %c0 = arith.constant 0 : index
    %c0_0 = arith.constant 0 : index
    %c0_1 = arith.constant 0 : index
    %0 = vector.load %arg2[%c0, %c0_0, %c0_1] : memref<1x64x16xf32, #tpu.memory_space<vmem>>, vector<1x64x16xf32>
    %1 = vector.shape_cast %0 : vector<1x64x16xf32> to vector<64x16xf32>
    %2 = arith.truncf %1 : vector<64x16xf32> to vector<64x16xbf16>
    %c0_2 = arith.constant 0 : index
    %c0_3 = arith.constant 0 : index
    %3 = vector.load %arg3[%c0_2, %c0_3] : memref<16x64xbf16, #tpu.memory_space<vmem>>, vector<16x64xbf16>
    %cst = arith.constant dense<0.000000e+00> : vector<16x16xf32>
    %4 = tpu.matmul %3, %2, %cst {dimension_numbers = #tpu.dot_dimension_numbers<[1], [0], [0], [1], [0, 0, 1, 1], [], []>} : vector<16x64xbf16>, vector<64x16xbf16>, vector<16x16xf32> -> vector<16x16xf32>
    %c0_4 = arith.constant 0 : index
    %c0_5 = arith.constant 0 : index
    %5 = vector.load %arg4[%c0_4, %c0_5] : memref<16x1xf32, #tpu.memory_space<vmem>>, vector<16x1xf32>
    %6 = vector.broadcast %5 : vector<16x1xf32> to vector<16x16xf32>
    %7 = arith.addf %4, %6 : vector<16x16xf32>
    %cst_6 = arith.constant 0.000000e+00 : f32
    %8 = vector.broadcast %cst_6 : f32 to vector<16x16xf32>
    %9 = arith.maximumf %7, %8 : vector<16x16xf32>
    %c0_7 = arith.constant 0 : index
    %c0_8 = arith.constant 0 : index
    %10 = vector.load %arg5[%c0_7, %c0_8] : memref<64x16xbf16, #tpu.memory_space<vmem>>, vector<64x16xbf16>
    %11 = arith.truncf %9 : vector<16x16xf32> to vector<16x16xbf16>
    %cst_9 = arith.constant dense<0.000000e+00> : vector<64x16xf32>
    %12 = tpu.matmul %10, %11, %cst_9 {dimension_numbers = #tpu.dot_dimension_numbers<[1], [0], [0], [1], [0, 0, 1, 1], [], []>} : vector<64x16xbf16>, vector<16x16xbf16>, vector<64x16xf32> -> vector<64x16xf32>
    %c0_10 = arith.constant 0 : index
    %c0_11 = arith.constant 0 : index
    %c0_12 = arith.constant 0 : index
    %13 = vector.load %arg6[%c0_10, %c0_11, %c0_12] : memref<1x64x1xf32, #tpu.memory_space<vmem>>, vector<1x64x1xf32>
    %14 = vector.shape_cast %13 : vector<1x64x1xf32> to vector<64x1xf32>
    %15 = vector.broadcast %14 : vector<64x1xf32> to vector<64x16xf32>
    %16 = arith.addf %12, %15 : vector<64x16xf32>
    %17 = arith.negf %16 : vector<64x16xf32>
    %18 = math.exp %17 : vector<64x16xf32>
    %cst_13 = arith.constant 1.000000e+00 : f32
    %19 = vector.broadcast %cst_13 : f32 to vector<64x16xf32>
    %20 = arith.addf %19, %18 : vector<64x16xf32>
    %21 = arith.divf %19, %20 : vector<64x16xf32>
    %22 = arith.truncf %21 : vector<64x16xf32> to vector<64x16xbf16>
    %c0_14 = arith.constant 0 : index
    %c0_15 = arith.constant 0 : index
    %c0_16 = arith.constant 0 : index
    %23 = vector.load %arg7[%c0_14, %c0_15, %c0_16] : memref<1x64x16xbf16, #tpu.memory_space<vmem>>, vector<1x64x16xbf16>
    %24 = vector.shape_cast %23 : vector<1x64x16xbf16> to vector<64x16xbf16>
    %25 = vector.shape_cast %22 : vector<64x16xbf16> to vector<1x64x16xbf16>
    tpu.vector_store %arg7[%c0_14, %c0_15, %c0_16], %25 {strides = array<i32>} : memref<1x64x16xbf16, #tpu.memory_space<vmem>>, vector<1x64x16xbf16>,
    return
  }
  func.func @transform_0(%arg0: i32, %arg1: i32) -> (i32, i32, i32) {
    %c0_i32 = arith.constant 0 : i32
    %c0_i32_0 = arith.constant 0 : i32
    return %arg0, %c0_i32, %arg1 : i32, i32, i32
  }
  func.func @transform_1(%arg0: i32, %arg1: i32) -> (i32, i32) {
    %c0_i32 = arith.constant 0 : i32
    %c0_i32_0 = arith.constant 0 : i32
    %c0_i32_1 = arith.constant 0 : i32
    return %c0_i32, %c0_i32_0 : i32, i32
  }
  func.func @transform_2(%arg0: i32, %arg1: i32) -> (i32, i32) {
    %c0_i32 = arith.constant 0 : i32
    %c0_i32_0 = arith.constant 0 : i32
    %c0_i32_1 = arith.constant 0 : i32
    return %c0_i32, %c0_i32_0 : i32, i32
  }
  func.func @transform_3(%arg0: i32, %arg1: i32) -> (i32, i32) {
    %c0_i32 = arith.constant 0 : i32
    %c0_i32_0 = arith.constant 0 : i32
    %c0_i32_1 = arith.constant 0 : i32
    return %c0_i32, %c0_i32_0 : i32, i32
  }
  func.func @transform_4(%arg0: i32, %arg1: i32) -> (i32, i32, i32) {
    %c0_i32 = arith.constant 0 : i32
    %c0_i32_0 = arith.constant 0 : i32
    %c0_i32_1 = arith.constant 0 : i32
    return %arg0, %c0_i32, %c0_i32_0 : i32, i32, i32
  }
  func.func @transform_5(%arg0: i32, %arg1: i32) -> (i32, i32, i32) {
    %c0_i32 = arith.constant 0 : i32
    %c0_i32_0 = arith.constant 0 : i32
    return %arg0, %c0_i32, %arg1 : i32, i32, i32
  }
}

</mosaic_0001>

<bundles_post_ra>
// kernel: tpu_custom_call.1
= control target key start
LH: loop header
LB: loop body
LE: loop exit
PB: predicated region body
PF: predicated region fallthrough
CT: control target
= control target key end

     0   :  { %s899_s18 = smov 0   ;;  %s901_s19 = smov 0   ;;  %s982_s0 = inlined_call_operand.vmem [shape: f32[2,64,16], index: 0, kind: input, shape index: {}]   ;;  %s983_s1 = inlined_call_operand.vmem [shape: bf16[16,64], index: 1, kind: input, shape index: {}]   ;;  %s984_s2 = inlined_call_operand.vmem [shape: f32[16,1], index: 2, kind: input, shape index: {}]   ;;  %s985_s3 = inlined_call_operand.vmem [shape: bf16[64,16], index: 3, kind: input, shape index: {}]   ;;  %s986_s4 = inlined_call_operand.vmem [shape: f32[2,64,1], index: 4, kind: input, shape index: {}]   ;;  %s987_s5 = inlined_call_operand.vmem [shape: bf16[2,64,16], index: 5, kind: output, shape index: {}]  }
   0x1   :  { %s903_s20 = smov 0  }
   0x2 LB: > { %s27_s21 = sadd.s32 1, %s860_s19  ;;  %p698_p0 = scmp.ge.s32.totalorder %s864_s20, 1  ;;  %s864_s20 = sphi %s903_s20, %s15_s20   ;;  %s860_s19 = sphi %s901_s19, %s989_s19   ;;  %s856_s18 = sphi %s899_s18, %s988_s18  }
   0x3   : > { %p29_p1 = scmp.ge.s32.totalorder %s27_s21, 2  ;;  %p216_p2 = scmp.lt.s32.totalorder %s864_s20, 3 }
   0x5   : > { %s991_s21 = smov (%p29_p1, %s27_s21), 0  ;;  %p217_p3 = pnand %p698_p0, %p216_p2 }
   0x6   : > { %p255_p4 = scmp.lt.s32.totalorder (!%p217_p3), %s856_s18, 1  ;;  %v866_v0 = vmov (!%p217_p3), 0.0   ;;  %vm867_vm0 = vmmov (!%p217_p3), 0   ;;  %v291_v1 = vld [vmem:[%s984_s2] sm:$0xff] (!%p217_p3)  ;;  %v868_v2 = vmov (!%p217_p3), 0   ;;  %v292_v3 = vld [vmem:[%s984_s2 + $0x8] sm:$0xff] (!%p217_p3) }
   0x7   : > { %220 = sbr.rel (%p217_p3) target bundleno = 513 (0x201), region = 40  ;;  %754 = vmatprep.subr.bf16.mxu0 (!%p217_p3), %v866_v0  ;;  %762 = vmatprep.mubr.msk.bf16.mxu0 (!%p217_p3), %vm867_vm0, %v866_v0  ;;  %v805_v19 = vld [vmem:[%s983_s1] sm:$0xff] (!%p217_p3)   ;;  %vm308_vm1 = vcmask (!%p217_p3), 523264   ;;  %vm432_vm2 = vcmask (!%p217_p3), 130048   ;;  %v807_v37 = vld [vmem:[%s985_s3 + $0x8] sm:$0xff] (!%p217_p3)   ;;  %v808_v38 = vld [vmem:[%s985_s3 + $0x10] sm:$0xff] (!%p217_p3)  }
   0x8   : > { %803 = vset.pattern.permute.xlu0 (!%p217_p3), %v868_v2  ;;  %804 = vset.pattern.permute.xlu1 (!%p217_p3), %v868_v2  ;;  %v806_v20 = vld [vmem:[%s985_s3] sm:$0xff] (!%p217_p3)   ;;  %v809_v39 = vld [vmem:[%s985_s3 + $0x18] sm:$0xff] (!%p217_p3)   ;;  %vm590_vm3 = vcmask (!%p217_p3), 125952  }
   0x9   : > { %295 = vperm.xlu0 (!%p217_p3), %803, %v291_v1   ;;  %768 = vmatprep.mubr.msk.bf16.mxu1 (!%p217_p3), %vm432_vm2, %v806_v20 }
   0xd   : > { %300 = vperm.xlu0 (!%p217_p3), %803, %v292_v3  }
   0xe   : > { %s993_s18 = smov (!%p255_p4, %s856_s18), 1 }
   0xf   : > { %s733_s24 = sshll.u32 %s993_s18, 6  ;;  %s735_s22 = sshll.u32 %s993_s18, 5 }
  0x10   : > { %s262_s29 = scalar_lea.vmem %s982_s0, %s733_s24  ;;  %s932_s7 = scalar_lea.vmem %s986_s4, %s733_s24 }
  0x11   : > { %v277_v4 = vld [vmem:[%s262_s29] sm:$0xff]  ;;  %v278_v5 = vld [vmem:[%s262_s29 + $0x8] sm:$0xff]  ;;  %v279_v6 = vld [vmem:[%s262_s29 + $0x10] sm:$0xff]  ;;  %s275_s25 = scalar_lea.vmem %s987_s5, %s735_s22 }
  0x12   : > { %v285_v7 = vpack.c.bf16 %v278_v5, %v277_v4  ;;  %v280_v8 = vld [vmem:[%s262_s29 + $0x18] sm:$0xff]  ;;  %v366_v9 = vld [vmem:[%s932_s7 + $0x10] sm:$0xff]  ;;  %v281_v11 = vld [vmem:[%s262_s29 + $0x20] sm:$0xff] }
  0x13   : > { %v286_v10 = vpack.c.bf16 %v280_v8, %v279_v6  ;;  %v282_v12 = vld [vmem:[%s262_s29 + $0x28] sm:$0xff]  ;;  %384 = vperm.xlu0 %803, %v366_v9   ;;  %v368_v13 = vld [vmem:[%s932_s7 + $0x20] sm:$0xff]  ;;  %v283_v15 = vld [vmem:[%s262_s29 + $0x30] sm:$0xff] }
  0x14   : > { %755 = vmatpush3.bf16.msra.mxu0 %v285_v7  ;;  %v287_v14 = vpack.c.bf16 %v282_v12, %v281_v11  ;;  %v284_v16 = vld [vmem:[%s262_s29 + $0x38] sm:$0xff]  ;;  %v370_v17 = vld [vmem:[%s932_s7 + $0x30] sm:$0xff]  ;;  %v364_v21 = vld [vmem:[%s932_s7] sm:$0xff] }
  0x15   : > { %756 = vmatprep.subr.bf16.mxu0 %v866_v0  ;;  %v288_v18 = vpack.c.bf16 %v284_v16, %v283_v15  ;;  %374 = vperm.xlu1 %804, %v364_v21   ;;  %v365_v22 = vld [vmem:[%s932_s7 + $0x8] sm:$0xff]  ;;  %v367_v23 = vld [vmem:[%s932_s7 + $0x18] sm:$0xff] }
  0x16   : > { %v369_v24 = vld [vmem:[%s932_s7 + $0x28] sm:$0xff]  ;;  %v371_v25 = vld [vmem:[%s932_s7 + $0x38] sm:$0xff] }
  0x17   : > { %394 = vperm.xlu0 %803, %v368_v13  }
  0x18   : > { %757 = vmatpush3.bf16.msra.mxu0 %v286_v10 }
  0x19   : > { %758 = vmatprep.subr.bf16.mxu0 %v866_v0  ;;  %379 = vperm.xlu1 %804, %v365_v22  }
  0x1b   : > { %404 = vperm.xlu0 %803, %v370_v17  }
  0x1c   : > { %759 = vmatpush3.bf16.msra.mxu0 %v287_v14 }
  0x1d   : > { %760 = vmatprep.subr.bf16.mxu0 %v866_v0  ;;  %389 = vperm.xlu1 %804, %v367_v23  }
  0x20   : > { %761 = vmatpush3.bf16.msra.mxu0 %v288_v18 }
  0x21   : > { %399 = vperm.xlu1 %804, %v369_v24  }
  0x23   : > { %763 = vmatmul.mubr.msk.bf16.vlgmr.msra.gmra.mrb[0].mxu0 %vm308_vm1, %v805_v19 }
  0x25   : > { %409 = vperm.xlu1 %804, %v371_v25  }
  0x88   : > { %v296_v26 = vpop.permute.xlu0 %295 }
  0x8c   : > { %v301_v30 = vpop.permute.xlu0 %300 }
  0x92   : > { %v385_v42 = vpop.permute.xlu0 %384 }
  0x94   : > { %v375_v40 = vpop.permute.xlu1 %374 }
  0x96   : > { %v395_v47 = vpop.permute.xlu0 %394 }
  0x98   : > { %v380_v41 = vpop.permute.xlu1 %379 }
  0x9a   : > { %v405_v58 = vpop.permute.xlu0 %404 }
  0x9c   : > { %v390_v43 = vpop.permute.xlu1 %389 }
  0xa0   : > { %v400_v53 = vpop.permute.xlu1 %399 }
  0xa4   : > { %v410_v62 = vpop.permute.xlu1 %409 }
  0xf6   : > { %v346_v27 = vpop.f32.mrb[0].mxu0 }
  0xf7   : > { %v347_v28 = vadd.f32 %v346_v27, %v296_v26  ;;  %v764_v29 = vpop.f32.mrb[1].mxu0 }
  0xf8   : > { %v349_v31 = vpop.f32.mrb[2].mxu0 }
  0xf9   : > { %v350_v32 = vadd.f32 %v349_v31, %v301_v30  ;;  %v765_v33 = vpop.f32.mrb[3].mxu0  ;;  %v353_v34 = vmax.f32 %v347_v28, 0.0 }
  0xfb   : > { %v354_v35 = vmax.f32 %v350_v32, 0.0 }
  0xfd   : > { %v363_v36 = vpack.c.bf16 %v354_v35, %v353_v34 }
  0xff   : > { %766 = vmatprep.subr.bf16.mxu1 %v363_v36 }
 0x100   : > { %767 = vmatpush3.bf16.msra.mxu1 %v363_v36 }
 0x103   : > { %769 = vmatmul.mubr.msk.bf16.vlgmr.msra.gmra.mrb[0].mxu1 %vm432_vm2, %v807_v37 }
 0x104   : > { %772 = vmatprep.mubr.msk.bf16.mxu1 %vm432_vm2, %v808_v38 }
 0x10b   : > { %773 = vmatmul.mubr.msk.bf16.gmra.mrb[4].mxu1 %vm432_vm2, %v809_v39 }
 0x1d6   : > { %v770_v44 = vpop.f32.mrb[0].mxu1 }
 0x1d7   : > { %v488_v45 = vadd.f32 %v770_v44, %v385_v42  ;;  %v479_v46 = vpop.f32.mrb[1].mxu1 }
 0x1d8   : > { %v480_v48 = vadd.f32 %v479_v46, %v375_v40  ;;  %v771_v49 = vpop.f32.mrb[2].mxu1 }
 0x1d9   : > { %v717_v50 = vmul.f32 -1.442695, %v488_v45  ;;  %v491_v51 = vadd.f32 %v771_v49, %v390_v43  ;;  %v482_v52 = vpop.f32.mrb[3].mxu1 }
 0x1da   : > { %v715_v54 = vmul.f32 -1.442695, %v480_v48  ;;  %v483_v55 = vadd.f32 %v482_v52, %v380_v41 }
 0x1db   : > { %810 = vpow2.f32 %v717_v50  ;;  %v718_v56 = vmul.f32 -1.442695, %v491_v51 }
 0x1dc   : > { %812 = vpow2.f32 %v715_v54  ;;  %v716_v57 = vmul.f32 -1.442695, %v483_v55 }
 0x1dd   : > { %814 = vpow2.f32 %v718_v56 }
 0x1de   : > { %816 = vpow2.f32 %v716_v57  ;;  %v774_v59 = vpop.f32.mrb[4].mxu1 }
 0x1df   : > { %v504_v60 = vadd.f32 %v774_v59, %v405_v58  ;;  %v495_v61 = vpop.f32.mrb[5].mxu1 }
 0x1e0   : > { %v496_v63 = vadd.f32 %v495_v61, %v395_v47  ;;  %v775_v0 = vpop.f32.mrb[6].mxu1 }
 0x1e1   : > { %v721_v1 = vmul.f32 -1.442695, %v504_v60  ;;  %v507_v2 = vadd.f32 %v775_v0, %v410_v62  ;;  %v498_v3 = vpop.f32.mrb[7].mxu1 }
 0x1e2   : > { %v719_v4 = vmul.f32 -1.442695, %v496_v63  ;;  %v499_v5 = vadd.f32 %v498_v3, %v400_v53 }
 0x1e3   : > { %818 = vpow2.f32 %v721_v1  ;;  %v722_v6 = vmul.f32 -1.442695, %v507_v2 }
 0x1e4   : > { %820 = vpow2.f32 %v719_v4  ;;  %v720_v7 = vmul.f32 -1.442695, %v499_v5 }
 0x1e5   : > { %v811_v8 = vpop.eup %810  ;;  %822 = vpow2.f32 %v722_v6 }
 0x1e6   : > { %v813_v9 = vpop.eup %812  ;;  %v536_v10 = vadd.f32 1.0, %v811_v8  ;;  %824 = vpow2.f32 %v720_v7 }
 0x1e7   : > { %v815_v11 = vpop.eup %814  ;;  %v534_v12 = vadd.f32 1.0, %v813_v9 }
 0x1e8   : > { %v817_v13 = vpop.eup %816  ;;  %826 = vrcp.f32 %v536_v10  ;;  %v537_v14 = vadd.f32 1.0, %v815_v11 }
 0x1e9   : > { %828 = vrcp.f32 %v534_v12  ;;  %v535_v15 = vadd.f32 1.0, %v817_v13 }
 0x1ea   : > { %830 = vrcp.f32 %v537_v14 }
 0x1eb   : > { %832 = vrcp.f32 %v535_v15 }
 0x1ed   : > { %v819_v16 = vpop.eup %818 }
 0x1ee   : > { %v821_v17 = vpop.eup %820  ;;  %v540_v18 = vadd.f32 1.0, %v819_v16 }
 0x1ef   : > { %v823_v19 = vpop.eup %822  ;;  %v538_v20 = vadd.f32 1.0, %v821_v17 }
 0x1f0   : > { %v825_v21 = vpop.eup %824  ;;  %834 = vrcp.f32 %v540_v18  ;;  %v541_v22 = vadd.f32 1.0, %v823_v19 }
 0x1f1   : > { %836 = vrcp.f32 %v538_v20  ;;  %v539_v23 = vadd.f32 1.0, %v825_v21 }
 0x1f2   : > { %v827_v24 = vpop.eup %826  ;;  %838 = vrcp.f32 %v541_v22 }
 0x1f3   : > { %v829_v25 = vpop.eup %828  ;;  %v738_v26 = vpack.c.bf16 %v827_v24, %v827_v24  ;;  %840 = vrcp.f32 %v539_v23 }
 0x1f4   : > { %v831_v27 = vpop.eup %830  ;;  %v736_v28 = vpack.c.bf16 %v829_v25, %v829_v25 }
 0x1f5   : > { %v833_v29 = vpop.eup %832  ;;  %593 = vst.msk [vmem:[%s275_s25 + $0x8] sm:$0xf] %vm590_vm3, %v738_v26  ;;  %v739_v30 = vpack.c.bf16 %v831_v27, %v831_v27 }
 0x1f6   : > { %591 = vst.msk [vmem:[%s275_s25] sm:$0xf] %vm590_vm3, %v736_v28  ;;  %v737_v31 = vpack.c.bf16 %v833_v29, %v833_v29 }
 0x1f7   : > { %594 = vst.msk [vmem:[%s275_s25 + $0xc] sm:$0xf] %vm590_vm3, %v739_v30 }
 0x1f8   : > { %592 = vst.msk [vmem:[%s275_s25 + $0x4] sm:$0xf] %vm590_vm3, %v737_v31 }
 0x1fa   : > { %v835_v32 = vpop.eup %834 }
 0x1fb   : > { %v837_v33 = vpop.eup %836  ;;  %v742_v34 = vpack.c.bf16 %v835_v32, %v835_v32 }
 0x1fc   : > { %v839_v35 = vpop.eup %838  ;;  %v740_v36 = vpack.c.bf16 %v837_v33, %v837_v33 }
 0x1fd   : > { %v841_v37 = vpop.eup %840  ;;  %597 = vst.msk [vmem:[%s275_s25 + $0x18] sm:$0xf] %vm590_vm3, %v742_v34  ;;  %v743_v38 = vpack.c.bf16 %v839_v35, %v839_v35 }
 0x1fe   : > { %595 = vst.msk [vmem:[%s275_s25 + $0x10] sm:$0xf] %vm590_vm3, %v740_v36  ;;  %v741_v39 = vpack.c.bf16 %v841_v37, %v841_v37 }
 0x1ff   : > { %598 = vst.msk [vmem:[%s275_s25 + $0x1c] sm:$0xf] %vm590_vm3, %v743_v38 }
 0x200   : > { %596 = vst.msk [vmem:[%s275_s25 + $0x14] sm:$0xf] %vm590_vm3, %v741_v39 }
 0x201 PF: > { %s15_s20 = sadd.s32 1, %s864_s20   ;;  %s988_s18 = smov %s860_s19 }
 0x202   : > { %p12_p5 = scmp.ge.s32.totalorder %s15_s20, 4   ;;  %s989_s19 = smov %s991_s21 }
 0x204   :  { %14 = sbr.rel (!%p12_p5) target bundleno = 2 (0x2), region = 73 }

</bundles_post_ra>
